<compile_context>
chip_gen: v5e
topology: v5e:2x2
jax: 0.10.0
libtpu: 0.0.40
codegen_flags: <defaults>
</compile_context>

<pallas_src>
import jax
import jax.numpy as jnp
from jax.experimental import pallas as pl
from jax.experimental.pallas import tpu as pltpu

IN_F = 7
IN_PAD = 8      # pad 7 input features -> 8 sublanes
HID = 50


def pm_net_kernel(x_ref, w1_ref, b1_ref, w2_ref, b2_ref, w3_ref, b3_ref, out_ref):
    # x tile: (8, TB) f32, batch on lanes. Cast once to bf16 for the MXU.
    x = x_ref[...].astype(jnp.bfloat16)

    # Layer 1: (50, 8) @ (8, TB) -> (50, TB), f32 accumulation.
    h1 = jnp.dot(w1_ref[...], x, preferred_element_type=jnp.float32)
    h1 = jnp.maximum(h1 + b1_ref[...], 0.0)          # bias (50,1) broadcasts over lanes

    # Layer 2: (50, 50) @ (50, TB) -> (50, TB).
    h2 = jnp.dot(w2_ref[...], h1.astype(jnp.bfloat16), preferred_element_type=jnp.float32)
    h2 = jnp.maximum(h2 + b2_ref[...], 0.0)

    # Layer 3 (single output row): VPU multiply + XLU sublane reduce, MXU stays free.
    y = jnp.sum(h2 * w3_ref[...], axis=0, keepdims=True) + b3_ref[...]   # (1, TB)
    out_ref[...] = y.astype(out_ref.dtype)


def pm_net_forward(x, params, *, tb=1024):
    """x: (B, 7) float32. params in torch layout: w (out, in), b (out,)."""
    w1, b1, w2, b2, w3, b3 = params
    B = x.shape[0]
    b_pad = ((B + tb - 1) // tb) * tb

    # Transposed, zero-padded activations: (8, B_pad); features on sublanes, batch on lanes.
    xT = jnp.zeros((IN_PAD, b_pad), jnp.float32).at[:IN_F, :B].set(x.T)

    # Weights: (out, in), bf16 for the MXU; fc1 input dim padded 7 -> 8 with zeros.
    w1p = jnp.zeros((HID, IN_PAD), jnp.float32).at[:, :IN_F].set(w1).astype(jnp.bfloat16)
    w2b = w2.astype(jnp.bfloat16)
    # fc3 weight kept f32: it is used on the VPU path.
    w3c = w3.reshape(HID, 1).astype(jnp.float32)
    b1c = b1.reshape(HID, 1)
    b2c = b2.reshape(HID, 1)
    b3c = b3.reshape(1, 1)

    const2d = lambda i: (0, 0)  # weights/biases resident in VMEM across grid steps

    out = pl.pallas_call(
        pm_net_kernel,
        out_shape=jax.ShapeDtypeStruct((1, b_pad), jnp.float32),
        grid=(b_pad // tb,),
        in_specs=[
            pl.BlockSpec((IN_PAD, tb), lambda i: (0, i)),   # x tile streams per step
            pl.BlockSpec((HID, IN_PAD), const2d),           # w1
            pl.BlockSpec((HID, 1), const2d),                # b1
            pl.BlockSpec((HID, HID), const2d),              # w2
            pl.BlockSpec((HID, 1), const2d),                # b2
            pl.BlockSpec((HID, 1), const2d),                # w3 (as a column)
            pl.BlockSpec((1, 1), const2d),                  # b3
        ],
        out_specs=pl.BlockSpec((1, tb), lambda i: (0, i)),
        compiler_params=pltpu.CompilerParams(
            dimension_semantics=("parallel",),              # shard batch tiles over TCs (v7x)
            vmem_limit_bytes=32 * 1024 * 1024,
        ),
    )(xT, w1p, b1c, w2b, b2c, w3c, b3c)

    return out[0, :B].reshape(B, 1)


def init_pm_net_params(key):
    """Matches nn.Linear default init: U(-1/sqrt(fan_in), 1/sqrt(fan_in)); torch (out, in) layout."""
    dims = [(IN_F, HID), (HID, HID), (HID, 1)]
    params = []
    for fan_in, fan_out in dims:
        key, kw, kb = jax.random.split(key, 3)
        bound = 1.0 / float(fan_in) ** 0.5
        w = jax.random.uniform(kw, (fan_out, fan_in), jnp.float32, -bound, bound)
        b = jax.random.uniform(kb, (fan_out,), jnp.float32, -bound, bound)
        params += [w, b]
    return tuple(params)


def pm_net_reference(x, params):
    """Pure-JAX f32 reference matching the PyTorch forward."""
    w1, b1, w2, b2, w3, b3 = params
    h = jnp.maximum(x @ w1.T + b1, 0.0)
    h = jnp.maximum(h @ w2.T + b2, 0.0)
    return h @ w3.T + b3


if __name__ == "__main__":
    key = jax.random.PRNGKey(0)
    key, kx = jax.random.split(key)
    batch = 8
    x = jax.random.normal(kx, (batch, IN_F), jnp.float32)  # PM_Net takes 7 input features

    params = init_pm_net_params(key)

    out = pm_net_forward(x, params)
    out = jax.block_until_ready(out)

    ref = pm_net_reference(x, params)
    assert out.shape == (batch, 1)
    # Kernel runs the MXU in bf16 (f32 accumulation), so compare loosely vs the f32 reference.
    assert jnp.allclose(out, ref, atol=5e-2, rtol=5e-2), (
        f"max abs diff {jnp.max(jnp.abs(out - ref))}"
    )

    print("KERNEL_OK")
</pallas_src>

<mosaic_0001>
module attributes {stable_mosaic.version = 11 : i64} {
  func.func @pm_net_kernel(%arg0: i32, %arg1: memref<8x1024xf32, #tpu.memory_space<vmem>>, %arg2: memref<50x8xbf16, #tpu.memory_space<vmem>>, %arg3: memref<50x1xf32, #tpu.memory_space<vmem>>, %arg4: memref<50x50xbf16, #tpu.memory_space<vmem>>, %arg5: memref<50x1xf32, #tpu.memory_space<vmem>>, %arg6: memref<50x1xf32, #tpu.memory_space<vmem>>, %arg7: memref<1x1xf32, #tpu.memory_space<vmem>>, %arg8: memref<1x1024xf32, #tpu.memory_space<vmem>>) attributes {dimension_semantics = [#tpu.dimension_semantics<parallel>], iteration_bounds = array<i64: 1>, scalar_prefetch = 0 : i64, scratch_operands = 0 : i64, tpu.core_type = #tpu.core_type<tc>, window_params = [{transform_indices = @transform_0, window_bounds = array<i64: 8, 1024>}, {pipeline_mode = #tpu.pipeline_mode<synchronous>, transform_indices = @transform_1, window_bounds = array<i64: 50, 8>}, {pipeline_mode = #tpu.pipeline_mode<synchronous>, transform_indices = @transform_2, window_bounds = array<i64: 50, 1>}, {pipeline_mode = #tpu.pipeline_mode<synchronous>, transform_indices = @transform_3, window_bounds = array<i64: 50, 50>}, {pipeline_mode = #tpu.pipeline_mode<synchronous>, transform_indices = @transform_4, window_bounds = array<i64: 50, 1>}, {pipeline_mode = #tpu.pipeline_mode<synchronous>, transform_indices = @transform_5, window_bounds = array<i64: 50, 1>}, {pipeline_mode = #tpu.pipeline_mode<synchronous>, transform_indices = @transform_6, window_bounds = array<i64: 1, 1>}, {transform_indices = @transform_7, window_bounds = array<i64: 1, 1024>}]} {
    %c0 = arith.constant 0 : index
    %c0_0 = arith.constant 0 : index
    %0 = vector.load %arg1[%c0, %c0_0] : memref<8x1024xf32, #tpu.memory_space<vmem>>, vector<8x1024xf32>
    %1 = arith.truncf %0 : vector<8x1024xf32> to vector<8x1024xbf16>
    %c0_1 = arith.constant 0 : index
    %c0_2 = arith.constant 0 : index
    %2 = vector.load %arg2[%c0_1, %c0_2] : memref<50x8xbf16, #tpu.memory_space<vmem>>, vector<50x8xbf16>
    %cst = arith.constant dense<0.000000e+00> : vector<50x1024xf32>
    %3 = tpu.matmul %2, %1, %cst {dimension_numbers = #tpu.dot_dimension_numbers<[1], [0], [0], [1], [0, 0, 1, 1], [], []>} : vector<50x8xbf16>, vector<8x1024xbf16>, vector<50x1024xf32> -> vector<50x1024xf32>
    %c0_3 = arith.constant 0 : index
    %c0_4 = arith.constant 0 : index
    %4 = vector.load %arg3[%c0_3, %c0_4] : memref<50x1xf32, #tpu.memory_space<vmem>>, vector<50x1xf32>
    %5 = vector.broadcast %4 : vector<50x1xf32> to vector<50x1024xf32>
    %6 = arith.addf %3, %5 : vector<50x1024xf32>
    %cst_5 = arith.constant 0.000000e+00 : f32
    %7 = vector.broadcast %cst_5 : f32 to vector<50x1024xf32>
    %8 = arith.maximumf %6, %7 : vector<50x1024xf32>
    %c0_6 = arith.constant 0 : index
    %c0_7 = arith.constant 0 : index
    %9 = vector.load %arg4[%c0_6, %c0_7] : memref<50x50xbf16, #tpu.memory_space<vmem>>, vector<50x50xbf16>
    %10 = arith.truncf %8 : vector<50x1024xf32> to vector<50x1024xbf16>
    %cst_8 = arith.constant dense<0.000000e+00> : vector<50x1024xf32>
    %11 = tpu.matmul %9, %10, %cst_8 {dimension_numbers = #tpu.dot_dimension_numbers<[1], [0], [0], [1], [0, 0, 1, 1], [], []>} : vector<50x50xbf16>, vector<50x1024xbf16>, vector<50x1024xf32> -> vector<50x1024xf32>
    %c0_9 = arith.constant 0 : index
    %c0_10 = arith.constant 0 : index
    %12 = vector.load %arg5[%c0_9, %c0_10] : memref<50x1xf32, #tpu.memory_space<vmem>>, vector<50x1xf32>
    %13 = vector.broadcast %12 : vector<50x1xf32> to vector<50x1024xf32>
    %14 = arith.addf %11, %13 : vector<50x1024xf32>
    %cst_11 = arith.constant 0.000000e+00 : f32
    %15 = vector.broadcast %cst_11 : f32 to vector<50x1024xf32>
    %16 = arith.maximumf %14, %15 : vector<50x1024xf32>
    %c0_12 = arith.constant 0 : index
    %c0_13 = arith.constant 0 : index
    %17 = vector.load %arg6[%c0_12, %c0_13] : memref<50x1xf32, #tpu.memory_space<vmem>>, vector<50x1xf32>
    %18 = vector.broadcast %17 : vector<50x1xf32> to vector<50x1024xf32>
    %19 = arith.mulf %16, %18 : vector<50x1024xf32>
    %cst_14 = arith.constant dense<0.000000e+00> : vector<1024xf32>
    %20 = vector.multi_reduction <add>, %19, %cst_14 [0] : vector<50x1024xf32> to vector<1024xf32>
    %21 = vector.shape_cast %20 : vector<1024xf32> to vector<1x1024xf32>
    %c0_15 = arith.constant 0 : index
    %c0_16 = arith.constant 0 : index
    %22 = vector.load %arg7[%c0_15, %c0_16] : memref<1x1xf32, #tpu.memory_space<vmem>>, vector<1x1xf32>
    %23 = vector.broadcast %22 : vector<1x1xf32> to vector<1x1024xf32>
    %24 = arith.addf %21, %23 : vector<1x1024xf32>
    %c0_17 = arith.constant 0 : index
    %c0_18 = arith.constant 0 : index
    %25 = vector.load %arg8[%c0_17, %c0_18] : memref<1x1024xf32, #tpu.memory_space<vmem>>, vector<1x1024xf32>
    tpu.vector_store %arg8[%c0_17, %c0_18], %24 {strides = array<i32>} : memref<1x1024xf32, #tpu.memory_space<vmem>>, vector<1x1024xf32>,
    return
  }
  func.func @transform_0(%arg0: i32) -> (i32, i32) {
    %c0_i32 = arith.constant 0 : i32
    %c0_i32_0 = arith.constant 0 : i32
    return %c0_i32, %arg0 : i32, i32
  }
  func.func @transform_1(%arg0: i32) -> (i32, i32) {
    %c0_i32 = arith.constant 0 : i32
    %c0_i32_0 = arith.constant 0 : i32
    %c0_i32_1 = arith.constant 0 : i32
    return %c0_i32, %c0_i32_0 : i32, i32
  }
  func.func @transform_2(%arg0: i32) -> (i32, i32) {
    %c0_i32 = arith.constant 0 : i32
    %c0_i32_0 = arith.constant 0 : i32
    %c0_i32_1 = arith.constant 0 : i32
    return %c0_i32, %c0_i32_0 : i32, i32
  }
  func.func @transform_3(%arg0: i32) -> (i32, i32) {
    %c0_i32 = arith.constant 0 : i32
    %c0_i32_0 = arith.constant 0 : i32
    %c0_i32_1 = arith.constant 0 : i32
    return %c0_i32, %c0_i32_0 : i32, i32
  }
  func.func @transform_4(%arg0: i32) -> (i32, i32) {
    %c0_i32 = arith.constant 0 : i32
    %c0_i32_0 = arith.constant 0 : i32
    %c0_i32_1 = arith.constant 0 : i32
    return %c0_i32, %c0_i32_0 : i32, i32
  }
  func.func @transform_5(%arg0: i32) -> (i32, i32) {
    %c0_i32 = arith.constant 0 : i32
    %c0_i32_0 = arith.constant 0 : i32
    %c0_i32_1 = arith.constant 0 : i32
    return %c0_i32, %c0_i32_0 : i32, i32
  }
  func.func @transform_6(%arg0: i32) -> (i32, i32) {
    %c0_i32 = arith.constant 0 : i32
    %c0_i32_0 = arith.constant 0 : i32
    %c0_i32_1 = arith.constant 0 : i32
    return %c0_i32, %c0_i32_0 : i32, i32
  }
  func.func @transform_7(%arg0: i32) -> (i32, i32) {
    %c0_i32 = arith.constant 0 : i32
    %c0_i32_0 = arith.constant 0 : i32
    return %c0_i32, %arg0 : i32, i32
  }
}

</mosaic_0001>

<bundles_post_ra>
// kernel: tpu_custom_call.1
= control target key start
LH: loop header
LB: loop body
LE: loop exit
PB: predicated region body
PF: predicated region fallthrough
CT: control target
= control target key end

     0   :  { %s1842_s0 = inlined_call_operand.vmem [shape: f32[8,1024], index: 0, kind: input, shape index: {}]   ;;  %s1843_s1 = inlined_call_operand.vmem [shape: bf16[50,8], index: 1, kind: input, shape index: {}]   ;;  %s1844_s2 = inlined_call_operand.vmem [shape: f32[50,1], index: 2, kind: input, shape index: {}]   ;;  %s1845_s3 = inlined_call_operand.vmem [shape: bf16[50,50], index: 3, kind: input, shape index: {}]   ;;  %s1846_s4 = inlined_call_operand.vmem [shape: f32[50,1], index: 4, kind: input, shape index: {}]   ;;  %s1847_s5 = inlined_call_operand.vmem [shape: f32[50,1], index: 5, kind: input, shape index: {}]   ;;  %s1848_s6 = inlined_call_operand.<no memory space> [shape: f32[1,1], index: 6, kind: input, shape index: {}]   ;;  %s1849_s7 = inlined_call_operand.hbm [shape: f32[1,1024], index: 7, kind: output, shape index: {}]  }
   0x1   :  { %v12_v0 = vstv %s1848_s6 }
   0x2   :  { %13 = vst [vmem:[#allocation2] sm:$0x1] %v12_v0 }
   0x3   :  { %v30_v1 = vld [vmem:[%s1842_s0] sm:$0xff]  ;;  %vm126_vm0 = vcmask 1043456   ;;  %v31_v2 = vld [vmem:[%s1842_s0 + $0x8] sm:$0xff]  ;;  %v32_v3 = vld [vmem:[%s1842_s0 + $0x10] sm:$0xff]  ;;  %v1235_v8 = vmov 0   ;;  %vm113_vm1 = vcmask 64512  }
   0x4   :  { %v38_v4 = vpack.c.bf16 %v30_v1, %v30_v1  ;;  %v39_v5 = vpack.c.bf16 %v31_v2, %v31_v2  ;;  %v40_v6 = vpack.c.bf16 %v32_v3, %v32_v3  ;;  %v33_v7 = vld [vmem:[%s1842_s0 + $0x18] sm:$0xff]  ;;  %1206 = vset.pattern.permute.xlu0 %v1235_v8  ;;  %v59_v9 = vld [vmem:[%s1844_s2 + $0x30] sm:$0x3]  ;;  %1207 = vset.pattern.permute.xlu1 %v1235_v8  ;;  %v1301_v14 = vld [vmem:[%s1843_s1] sm:$0xff] }
   0x5   :  { %v41_v10 = vpack.c.bf16 %v33_v7, %v33_v7  ;;  %92 = vperm.xlu0 %1206, %v59_v9   ;;  %1208 = vset.pattern.permute.xlu2 %v1235_v8  ;;  %v58_v15 = vld [vmem:[%s1844_s2 + $0x28] sm:$0xff] }
   0x6   :  { %v128_v11 = vsel %vm126_vm0, %v38_v4, 0  ;;  %v131_v12 = vsel %vm126_vm0, %v39_v5, 0  ;;  %v134_v13 = vsel %vm126_vm0, %v40_v6, 0 }
   0x7   :  { %158 = vmatpush.bf16.msra.mxu0 %v128_v11  ;;  %186 = vmatpush.bf16.msra.mxu1 %v131_v12  ;;  %v137_v16 = vsel %vm126_vm0, %v41_v10, 0 }
   0x8   :  { %14 = vsyncpa [#allocation4], 0  ;;  %214 = vmatpush.bf16.msra.mxu2 %v134_v13  ;;  %242 = vmatpush.bf16.msra.mxu3 %v137_v16  ;;  %v57_v17 = vld [vmem:[%s1844_s2 + $0x20] sm:$0xff]  ;;  %v56_v18 = vld [vmem:[%s1844_s2 + $0x18] sm:$0xff]  ;;  %vm543_vm2 = vcmask 1040384   ;;  %vm530_vm3 = vcmask 408576  }
   0x9   :  { %87 = vperm.xlu1 %1207, %v58_v15   ;;  %77 = vperm.xlu2 %1208, %v56_v18   ;;  %v55_v19 = vld [vmem:[%s1844_s2 + $0x10] sm:$0xff]  ;;  %v53_v20 = vld [vmem:[%s1844_s2] sm:$0xff]  ;;  %v54_v21 = vld [vmem:[%s1844_s2 + $0x8] sm:$0xff]  ;;  %vm951_vm4 = vcmask 1041408   ;;  %vm1082_vm5 = vcmask 1042434   ;;  %vm1085_vm6 = vcmask 1044484  }
   0xa   :  { %1122 = vmatmul.msk.bf16.vlgmr.msra.gmra.mxu0 %vm113_vm1, %v1301_v14  ;;  %1126 = vmatmul.msk.bf16.vlgmr.msra.gmra.mxu1 %vm113_vm1, %v1301_v14  ;;  %v1333_v22 = vld [vmem:[%s1843_s1 + $0x8] sm:$0xff]  ;;  %v470_v23 = vld [vmem:[%s1846_s4] sm:$0xff]  ;;  %v472_v24 = vld [vmem:[%s1846_s4 + $0x10] sm:$0xff]  ;;  %vm1087_vm7 = vcmask 1046534   ;;  %vm1089_vm8 = vcmask 1045508   ;;  %s1101_s24 = sshll.u32 %s1849_s7, 4  ;;  %s1102_s24 = int_to_ptr.hbm [resolvable:$true] %s1101_s24 }
   0xb   :  { %1130 = vmatmul.msk.bf16.vlgmr.msra.gmra.mxu2 %vm113_vm1, %v1301_v14  ;;  %1134 = vmatmul.msk.bf16.vlgmr.msra.gmra.mxu3 %vm113_vm1, %v1301_v14  ;;  %v36_v25 = vld [vmem:[%s1842_s0 + $0x30] sm:$0xff]  ;;  %v37_v26 = vld [vmem:[%s1842_s0 + $0x38] sm:$0xff]  ;;  %v34_v29 = vld [vmem:[%s1842_s0 + $0x20] sm:$0xff] }
   0xc   :  { %v44_v27 = vpack.c.bf16 %v36_v25, %v36_v25  ;;  %v45_v28 = vpack.c.bf16 %v37_v26, %v37_v26  ;;  %v35_v30 = vld [vmem:[%s1842_s0 + $0x28] sm:$0xff]  ;;  %v42_v31 = vpack.c.bf16 %v34_v29, %v34_v29  ;;  %v473_v35 = vld [vmem:[%s1846_s4 + $0x18] sm:$0xff]  ;;  %v1200_v39 = vld [vmem:[%s1843_s1 + $0x10] sm:$0xff] }
   0xd   :  { %82 = vperm.xlu0 %1206, %v57_v17   ;;  %v43_v32 = vpack.c.bf16 %v35_v30, %v35_v30  ;;  %v849_v38 = vld [vmem:[%s1847_s5 + $0x8] sm:$0xff]  ;;  %v474_v40 = vld [vmem:[%s1846_s4 + $0x20] sm:$0xff]  ;;  %v851_v43 = vld [vmem:[%s1847_s5 + $0x18] sm:$0xff] }
   0xe   :  { %v146_v33 = vsel %vm126_vm0, %v44_v27, 0  ;;  %v149_v34 = vsel %vm126_vm0, %v45_v28, 0  ;;  %v140_v36 = vsel %vm126_vm0, %v42_v31, 0  ;;  %v471_v41 = vld [vmem:[%s1846_s4 + $0x8] sm:$0xff]  ;;  %v52_v44 = vld [vmem:[%s1843_s1 + $0x18] sm:$0x1] }
   0xf   :  { %326 = vmatpush.bf16.msrb.mxu2 %v146_v33  ;;  %354 = vmatpush.bf16.msrb.mxu3 %v149_v34  ;;  %v143_v37 = vsel %vm126_vm0, %v43_v32, 0  ;;  %v475_v42 = vld [vmem:[%s1846_s4 + $0x28] sm:$0xff]  ;;  %v848_v45 = vld [vmem:[%s1847_s5] sm:$0xff]  ;;  %v108_v46 = vunpack.c.l.b16 %v52_v44  ;;  %v850_v50 = vld [vmem:[%s1847_s5 + $0x10] sm:$0xff] }
  0x10   :  { %270 = vmatpush.bf16.msrb.mxu0 %v140_v36  ;;  %298 = vmatpush.bf16.msrb.mxu1 %v143_v37  ;;  %v852_v47 = vld [vmem:[%s1847_s5 + $0x20] sm:$0xff]  ;;  %v853_v49 = vld [vmem:[%s1847_s5 + $0x28] sm:$0xff]  ;;  %v476_v52 = vld [vmem:[%s1846_s4 + $0x30] sm:$0x3] }
  0x11   :  { %72 = vperm.xlu1 %1207, %v55_v19   ;;  %62 = vperm.xlu2 %1208, %v53_v20   ;;  %v112_v48 = vpack.c.b16 %v108_v46, %v108_v46  ;;  %v1051_v51 = vld [vmem:[#allocation2] sm:$0x1]  ;;  %v854_v53 = vld [vmem:[%s1847_s5 + $0x30] sm:$0x3] }
  0x15   :  { %67 = vperm.xlu0 %1206, %v54_v21  }
  0x19   :  { %479 = vperm.xlu1 %1207, %v470_v23   ;;  %484 = vperm.xlu2 %1208, %v471_v41  }
  0x1a   :  { %1123 = vmatmul.msk.bf16.gmra.mxu0 %vm113_vm1, %v1333_v22  ;;  %1127 = vmatmul.msk.bf16.gmra.mxu1 %vm113_vm1, %v1333_v22 }
  0x1b   :  { %1131 = vmatmul.msk.bf16.gmra.mxu2 %vm113_vm1, %v1333_v22  ;;  %1135 = vmatmul.msk.bf16.gmra.mxu3 %vm113_vm1, %v1333_v22 }
  0x1d   :  { %489 = vperm.xlu0 %1206, %v472_v24  }
  0x21   :  { %494 = vperm.xlu1 %1207, %v473_v35   ;;  %857 = vperm.xlu2 %1208, %v848_v45  }
  0x25   :  { %862 = vperm.xlu0 %1206, %v849_v38  }
  0x29   :  { %499 = vperm.xlu1 %1207, %v474_v40   ;;  %867 = vperm.xlu2 %1208, %v850_v50  }
  0x2a   :  { %1124 = vmatmul.msk.bf16.gmra.mxu0 %vm113_vm1, %v1200_v39  ;;  %1128 = vmatmul.msk.bf16.gmra.mxu1 %vm113_vm1, %v1200_v39 }
  0x2b   :  { %1132 = vmatmul.msk.bf16.gmra.mxu2 %vm113_vm1, %v1200_v39  ;;  %1136 = vmatmul.msk.bf16.gmra.mxu3 %vm113_vm1, %v1200_v39 }
  0x2d   :  { %504 = vperm.xlu0 %1206, %v475_v42  }
  0x31   :  { %872 = vperm.xlu1 %1207, %v851_v43   ;;  %509 = vperm.xlu2 %1208, %v476_v52  }
  0x35   :  { %877 = vperm.xlu0 %1206, %v852_v47  }
  0x39   :  { %882 = vperm.xlu1 %1207, %v853_v49   ;;  %887 = vperm.xlu2 %1208, %v854_v53  }
  0x3a   :  { %1125 = vmatmul.msk.bf16.gmra.mxu0 %vm113_vm1, %v112_v48  ;;  %1129 = vmatmul.msk.bf16.gmra.mxu1 %vm113_vm1, %v112_v48 }
  0x3b   :  { %1133 = vmatmul.msk.bf16.gmra.mxu2 %vm113_vm1, %v112_v48  ;;  %1137 = vmatmul.msk.bf16.gmra.mxu3 %vm113_vm1, %v112_v48 }
  0x3d   :  { %1054 = vperm.xlu0 %1206, %v1051_v51  }
  0x4a   :  { %1138 = vmatmul.msk.bf16.vlgmr.msrb.gmra.mxu0 %vm113_vm1, %v1301_v14  ;;  %1142 = vmatmul.msk.bf16.vlgmr.msrb.gmra.mxu1 %vm113_vm1, %v1301_v14 }
  0x4b   :  { %1146 = vmatmul.msk.bf16.vlgmr.msrb.gmra.mxu2 %vm113_vm1, %v1301_v14  ;;  %1150 = vmatmul.msk.bf16.vlgmr.msrb.gmra.mxu3 %vm113_vm1, %v1301_v14 }
  0x5a   :  { %1139 = vmatmul.msk.bf16.gmra.mxu0 %vm113_vm1, %v1333_v22  ;;  %1143 = vmatmul.msk.bf16.gmra.mxu1 %vm113_vm1, %v1333_v22 }
  0x5b   :  { %1147 = vmatmul.msk.bf16.gmra.mxu2 %vm113_vm1, %v1333_v22  ;;  %1151 = vmatmul.msk.bf16.gmra.mxu3 %vm113_vm1, %v1333_v22 }
  0x63   :  { %v1457_v9 = vpop.permute.xlu2 %77 }
  0x6a   :  { %1140 = vmatmul.msk.bf16.gmra.mxu0 %vm113_vm1, %v1200_v39  ;;  %1144 = vmatmul.msk.bf16.gmra.mxu1 %vm113_vm1, %v1200_v39 }
  0x6b   :  { %1148 = vmatmul.msk.bf16.gmra.mxu2 %vm113_vm1, %v1200_v39  ;;  %1152 = vmatmul.msk.bf16.gmra.mxu3 %vm113_vm1, %v1200_v39  ;;  %v1465_v22 = vpop.permute.xlu2 %62 }
  0x77   :  { %v1451_v4 = vpop.permute.xlu0 %92 }
  0x7a   :  { %1141 = vmatmul.msk.bf16.gmra.mxu0 %vm113_vm1, %v112_v48  ;;  %1145 = vmatmul.msk.bf16.gmra.mxu1 %vm113_vm1, %v112_v48 }
  0x7b   :  { %1149 = vmatmul.msk.bf16.gmra.mxu2 %vm113_vm1, %v112_v48  ;;  %1153 = vmatmul.msk.bf16.gmra.mxu3 %vm113_vm1, %v112_v48  ;;  %v1459_v14 = vpop.permute.xlu1 %87 }
  0x7f   :  { %v1461_v15 = vpop.permute.xlu0 %82 }
  0x83   :  { %v1471_v27 = vpop.permute.xlu1 %72 }
  0x87   :  { %v160_v54 = vpop.f32.mrf.mxu0  ;;  %v188_v55 = vpop.f32.mrf.mxu1 }
  0x88   :  { %v1474_v30 = vadd.f32 %v160_v54, %v1465_v22  ;;  %v1476_v31 = vpop.permute.xlu0 %67  ;;  %v1481_v34 = vadd.f32 %v188_v55, %v1465_v22 }
  0x8e   :  { %v1439_v56 = vpop.f32.mrf.mxu2  ;;  %v1441_v57 = vpop.f32.mrf.mxu3 }
  0x8f   :  { %v162_v58 = vpop.f32.mrf.mxu0  ;;  %v190_v59 = vpop.f32.mrf.mxu1 }
  0x90   :  { %v163_v47 = vadd.f32 %v162_v58, %v1476_v31  ;;  %v191_v48 = vadd.f32 %v190_v59, %v1476_v31 }
  0x96   :  { %v1443_v60 = vpop.f32.mrf.mxu2  ;;  %v1445_v61 = vpop.f32.mrf.mxu3 }
  0x97   :  { %v165_v62 = vpop.f32.mrf.mxu0  ;;  %v193_v63 = vpop.f32.mrf.mxu1 }
  0x98   :  { %v166_v32 = vadd.f32 %v165_v62, %v1471_v27  ;;  %v194_v33 = vadd.f32 %v193_v63, %v1471_v27 }
  0x9a   :  { %v391_v53 = vmax.f32 %v166_v32, 0.0  ;;  %v392_v54 = vmax.f32 %v194_v33, 0.0 }
  0x9e   :  { %v1447_v0 = vpop.f32.mrf.mxu2  ;;  %v1449_v1 = vpop.f32.mrf.mxu3 }
  0x9f   :  { %v167_v2 = vpop.f32.mrf.mxu0  ;;  %v195_v3 = vpop.f32.mrf.mxu1 }
  0xa0   :  { %v168_v35 = vadd.f32 %v167_v2, %v1457_v9  ;;  %v196_v36 = vadd.f32 %v195_v3, %v1457_v9 }
  0xa2   :  { %v399_v55 = vmax.f32 %v168_v35, 0.0  ;;  %v400_v62 = vmax.f32 %v196_v36, 0.0  ;;  %v247_v35 = vadd.f32 %v1445_v61, %v1476_v31 }
  0xa6   :  { %v1453_v5 = vpop.f32.mrf.mxu2  ;;  %v1455_v6 = vpop.f32.mrf.mxu3 }
  0xa7   :  { %v170_v7 = vpop.f32.mrf.mxu0  ;;  %v198_v8 = vpop.f32.mrf.mxu1 }
  0xa8   :  { %v171_v23 = vadd.f32 %v170_v7, %v1461_v15  ;;  %v199_v24 = vadd.f32 %v198_v8, %v1461_v15 }
  0xaa   :  { %v407_v39 = vmax.f32 %v171_v23, 0.0  ;;  %v408_v40 = vmax.f32 %v199_v24, 0.0  ;;  %v252_v23 = vadd.f32 %v1455_v6, %v1457_v9  ;;  %v219_v6 = vadd.f32 %v1443_v60, %v1476_v31 }
  0xab   :  { %v245_v60 = vadd.f32 %v1441_v57, %v1465_v22 }
  0xae   :  { %v226_v10 = vpop.f32.mrf.mxu2  ;;  %v254_v11 = vpop.f32.mrf.mxu3 }
  0xaf   :  { %v172_v12 = vpop.f32.mrf.mxu0  ;;  %v200_v13 = vpop.f32.mrf.mxu1  ;;  %v227_v8 = vadd.f32 %v226_v10, %v1461_v15 }
  0xb0   :  { %v173_v25 = vadd.f32 %v172_v12, %v1459_v14  ;;  %v201_v26 = vadd.f32 %v200_v13, %v1459_v14  ;;  %v255_v12 = vadd.f32 %v254_v11, %v1461_v15  ;;  %v375_v13 = vmax.f32 %v1474_v30, 0.0 }
  0xb1   :  { %v250_v30 = vadd.f32 %v1449_v1, %v1471_v27  ;;  %v409_v32 = vmax.f32 %v227_v8, 0.0  ;;  %v402_v1 = vmax.f32 %v252_v23, 0.0 }
  0xb2   :  { %v415_v41 = vmax.f32 %v173_v25, 0.0  ;;  %v416_v42 = vmax.f32 %v201_v26, 0.0  ;;  %v446_v26 = vpack.c.bf16 %v399_v55, %v391_v53  ;;  %v410_v33 = vmax.f32 %v255_v12, 0.0 }
  0xb3   :  { %v394_v61 = vmax.f32 %v250_v30, 0.0 }
  0xb4   :  { %v454_v7 = vpack.c.bf16 %v415_v41, %v407_v39  ;;  %v455_v59 = vpack.c.bf16 %v416_v42, %v408_v40  ;;  %v217_v42 = vadd.f32 %v1439_v56, %v1465_v22 }
  0xb6   :  { %v228_v16 = vpop.f32.mrf.mxu2  ;;  %v256_v17 = vpop.f32.mrf.mxu3  ;;  %v377_v56 = vmax.f32 %v217_v42, 0.0 }
  0xb7   :  { %v175_v18 = vpop.f32.mrf.mxu0  ;;  %v203_v19 = vpop.f32.mrf.mxu1  ;;  %v229_v63 = vadd.f32 %v228_v16, %v1459_v14  ;;  %v257_v2 = vadd.f32 %v256_v17, %v1459_v14  ;;  %v384_v16 = vmax.f32 %v191_v48, 0.0  ;;  %v224_v17 = vadd.f32 %v1453_v5, %v1457_v9 }
  0xb8   :  { %v176_v20 = vadd.f32 %v175_v18, %v1451_v4  ;;  %v204_v21 = vadd.f32 %v203_v19, %v1451_v4  ;;  %v376_v18 = vmax.f32 %v1481_v34, 0.0  ;;  %v449_v48 = vpack.c.bf16 %v402_v1, %v394_v61 }
  0xb9   :  { %v417_v24 = vmax.f32 %v229_v63, 0.0  ;;  %v418_v10 = vmax.f32 %v257_v2, 0.0 }
  0xba   :  { %v423_v28 = vmax.f32 %v176_v20, 0.0  ;;  %v424_v29 = vmax.f32 %v204_v21, 0.0  ;;  %v383_v21 = vmax.f32 %v163_v47, 0.0  ;;  %v439_v41 = vpack.c.bf16 %v384_v16, %v376_v18 }
  0xbb   :  { %v457_v39 = vpack.c.bf16 %v418_v10, %v410_v33 }
  0xbc   :  { %v462_v37 = vpack.c.bf16 %v423_v28, %v423_v28  ;;  %v463_v38 = vpack.c.bf16 %v424_v29, %v424_v29  ;;  %v447_v28 = vpack.c.bf16 %v400_v62, %v392_v54  ;;  %v222_v29 = vadd.f32 %v1447_v0, %v1471_v27 }
  0xbd   :  { %v401_v0 = vmax.f32 %v224_v17, 0.0  ;;  %v438_v40 = vpack.c.bf16 %v383_v21, %v375_v13 }
  0xbe   :  { %v231_v43 = vpop.f32.mrf.mxu2  ;;  %v259_v44 = vpop.f32.mrf.mxu3  ;;  %v545_v45 = vsel %vm543_vm2, %v462_v37, 0  ;;  %v548_v46 = vsel %vm543_vm2, %v463_v38, 0  ;;  %v456_v38 = vpack.c.bf16 %v417_v24, %v409_v32  ;;  %v437_v24 = vld [vmem:[%s1845_s3 + $0x18] sm:$0x1] }
  0xbf   :  { %v232_v49 = vadd.f32 %v231_v43, %v1451_v4  ;;  %v260_v50 = vadd.f32 %v259_v44, %v1451_v4  ;;  %v177_v51 = vpop.f32.mrf.mxu0  ;;  %v205_v52 = vpop.f32.mrf.mxu1  ;;  %572 = vmatpush.bf16.msra.mxu0 %v545_v45  ;;  %600 = vmatpush.bf16.msra.mxu1 %v548_v46  ;;  %v393_v43 = vmax.f32 %v222_v29, 0.0  ;;  %v385_v44 = vmax.f32 %v219_v6, 0.0  ;;  %v1522_v45 = vld [vmem:[%s1845_s3] sm:$0xff] }
  0xc0   :  { %v386_v46 = vmax.f32 %v247_v35, 0.0 }
  0xc1   :  { %v425_v3 = vmax.f32 %v232_v49, 0.0  ;;  %v426_v58 = vmax.f32 %v260_v50, 0.0  ;;  %v448_v47 = vpack.c.bf16 %v401_v0, %v393_v43  ;;  %v378_v49 = vmax.f32 %v245_v60, 0.0 }
  0xc2   :  { %v440_v53 = vpack.c.bf16 %v385_v44, %v377_v56 }
  0xc3   :  { %v464_v19 = vpack.c.bf16 %v425_v3, %v425_v3  ;;  %v465_v20 = vpack.c.bf16 %v426_v58, %v426_v58  ;;  %573 = vmatpush.bf16.msra.mxu0 %v454_v7  ;;  %601 = vmatpush.bf16.msra.mxu1 %v455_v59  ;;  %v441_v54 = vpack.c.bf16 %v386_v46, %v378_v49  ;;  %v1543_v3 = vld [vmem:[%s1845_s3 + $0x8] sm:$0xff] }
  0xc5   :  { %v551_v11 = vsel %vm543_vm2, %v464_v19, 0  ;;  %v554_v25 = vsel %vm543_vm2, %v465_v20, 0  ;;  %v1564_v20 = vld [vmem:[%s1845_s3 + $0x10] sm:$0xff]  ;;  %s1236_s3 = smov [#allocation3]  }
  0xc6   :  { %v233_v5 = vpop.f32.mrf.mxu2  ;;  %v261_v34 = vpop.f32.mrf.mxu3  ;;  %628 = vmatpush.bf16.msra.mxu2 %v551_v11  ;;  %656 = vmatpush.bf16.msra.mxu3 %v554_v25  ;;  %s1099_s21 = sshll.u32 %s1236_s3, 4  ;;  %s1100_s21 = int_to_ptr.vmem [resolvable:$true] %s1099_s21 }
  0xc7   :  { %v1511_v36 = vpop.f32.mrf.mxu0  ;;  %v1513_v37 = vpop.f32.mrf.mxu1  ;;  %574 = vmatpush.bf16.msra.mxu0 %v446_v26  ;;  %602 = vmatpush.bf16.msra.mxu1 %v447_v28  ;;  %v525_v28 = vunpack.c.l.b16 %v437_v24 }
  0xc8   :  { %v1586_v35 = vadd.f32 %v1511_v36, %v1465_v22  ;;  %v1590_v0 = vadd.f32 %v1513_v37, %v1465_v22 }
  0xca   :  { %629 = vmatpush.bf16.msra.mxu2 %v456_v38  ;;  %657 = vmatpush.bf16.msra.mxu3 %v457_v39  ;;  %v1595_v38 = vpack.c.b16 %v525_v28, %v525_v28 }
  0xcb   :  { %575 = vmatpush.bf16.msra.mxu0 %v438_v40  ;;  %603 = vmatpush.bf16.msra.mxu1 %v439_v41 }
  0xce   :  { %v1524_v50 = vpop.f32.mrf.mxu2  ;;  %v1526_v57 = vpop.f32.mrf.mxu3  ;;  %630 = vmatpush.bf16.msra.mxu2 %v448_v47  ;;  %658 = vmatpush.bf16.msra.mxu3 %v449_v48 }
  0xcf   :  { %1166 = vmatmul.msk.bf16.vlgmr.msra.gmra.mxu0 %vm530_vm3, %v1522_v45  ;;  %1170 = vmatmul.msk.bf16.vlgmr.msra.gmra.mxu1 %vm530_vm3, %v1522_v45  ;;  %v274_v51 = vpop.f32.mrf.mxu0  ;;  %v302_v52 = vpop.f32.mrf.mxu1 }
  0xd0   :  { %v1580_v32 = vadd.f32 %v274_v51, %v1476_v31  ;;  %v1593_v1 = vadd.f32 %v302_v52, %v1476_v31 }
  0xd2   :  { %631 = vmatpush.bf16.msra.mxu2 %v440_v53  ;;  %659 = vmatpush.bf16.msra.mxu3 %v441_v54  ;;  %v387_v60 = vmax.f32 %v1580_v32, 0.0  ;;  %v388_v49 = vmax.f32 %v1593_v1, 0.0 }
  0xd5   :  { %1174 = vmatmul.msk.bf16.vlgmr.msra.gmra.mxu2 %vm530_vm3, %v1522_v45  ;;  %1178 = vmatmul.msk.bf16.vlgmr.msra.gmra.mxu3 %vm530_vm3, %v1522_v45 }
  0xd6   :  { %v1536_v55 = vpop.f32.mrf.mxu2  ;;  %v1538_v62 = vpop.f32.mrf.mxu3 }
  0xd7   :  { %v277_v63 = vpop.f32.mrf.mxu0  ;;  %v305_v2 = vpop.f32.mrf.mxu1 }
  0xd8   :  { %v278_v36 = vadd.f32 %v277_v63, %v1471_v27  ;;  %v306_v51 = vadd.f32 %v305_v2, %v1471_v27 }
  0xde   :  { %v1545_v58 = vpop.f32.mrf.mxu2  ;;  %v1547_v7 = vpop.f32.mrf.mxu3 }
  0xdf   :  { %1167 = vmatmul.msk.bf16.gmra.mxu0 %vm530_vm3, %v1543_v3  ;;  %1171 = vmatmul.msk.bf16.gmra.mxu1 %vm530_vm3, %v1543_v3  ;;  %v279_v59 = vpop.f32.mrf.mxu0  ;;  %v307_v8 = vpop.f32.mrf.mxu1 }
  0xe0   :  { %v280_v43 = vadd.f32 %v279_v59, %v1457_v9  ;;  %v308_v37 = vadd.f32 %v307_v8, %v1457_v9 }
  0xe2   :  { %v403_v2 = vmax.f32 %v280_v43, 0.0 }
  0xe5   :  { %1175 = vmatmul.msk.bf16.gmra.mxu2 %vm530_vm3, %v1543_v3  ;;  %1179 = vmatmul.msk.bf16.gmra.mxu3 %vm530_vm3, %v1543_v3 }
  0xe6   :  { %v1557_v12 = vpop.f32.mrf.mxu2  ;;  %v1559_v13 = vpop.f32.mrf.mxu3 }
  0xe7   :  { %v282_v18 = vpop.f32.mrf.mxu0  ;;  %v310_v19 = vpop.f32.mrf.mxu1 }
  0xe8   :  { %v283_v39 = vadd.f32 %v282_v18, %v1461_v15  ;;  %v311_v40 = vadd.f32 %v310_v19, %v1461_v15 }
  0xea   :  { %v411_v59 = vmax.f32 %v283_v39, 0.0  ;;  %v412_v8 = vmax.f32 %v311_v40, 0.0 }
  0xee   :  { %v338_v21 = vpop.f32.mrf.mxu2  ;;  %v366_v16 = vpop.f32.mrf.mxu3 }
  0xef   :  { %1168 = vmatmul.msk.bf16.gmra.mxu0 %vm530_vm3, %v1564_v20  ;;  %1172 = vmatmul.msk.bf16.gmra.mxu1 %vm530_vm3, %v1564_v20  ;;  %v284_v17 = vpop.f32.mrf.mxu0  ;;  %v312_v23 = vpop.f32.mrf.mxu1  ;;  %v339_v24 = vadd.f32 %v338_v21, %v1461_v15  ;;  %v334_v21 = vadd.f32 %v1545_v58, %v1471_v27  ;;  %v380_v58 = vmax.f32 %v1590_v0, 0.0 }
  0xf0   :  { %v285_v33 = vadd.f32 %v284_v17, %v1459_v14  ;;  %v313_v5 = vadd.f32 %v312_v23, %v1459_v14  ;;  %v404_v17 = vmax.f32 %v308_v37, 0.0 }
  0xf2   :  { %v419_v61 = vmax.f32 %v285_v33, 0.0  ;;  %v420_v44 = vmax.f32 %v313_v5, 0.0 }
  0xf4   :  { %v459_v28 = vpack.c.bf16 %v420_v44, %v412_v8  ;;  %v443_v44 = vpack.c.bf16 %v388_v49, %v380_v58 }
  0xf5   :  { %1176 = vmatmul.msk.bf16.gmra.mxu2 %vm530_vm3, %v1564_v20  ;;  %1180 = vmatmul.msk.bf16.gmra.mxu3 %vm530_vm3, %v1564_v20 }
  0xf6   :  { %v340_v10 = vpop.f32.mrf.mxu2  ;;  %v368_v11 = vpop.f32.mrf.mxu3 }
  0xf7   :  { %v287_v25 = vpop.f32.mrf.mxu0  ;;  %v315_v26 = vpop.f32.mrf.mxu1  ;;  %v341_v18 = vadd.f32 %v340_v10, %v1459_v14  ;;  %v369_v19 = vadd.f32 %v368_v11, %v1459_v14  ;;  %v336_v10 = vadd.f32 %v1557_v12, %v1457_v9  ;;  %v364_v14 = vadd.f32 %v1559_v13, %v1457_v9 }
  0xf8   :  { %v288_v29 = vadd.f32 %v287_v25, %v1451_v4  ;;  %v316_v30 = vadd.f32 %v315_v26, %v1451_v4  ;;  %v367_v25 = vadd.f32 %v366_v16, %v1461_v15  ;;  %v458_v26 = vpack.c.bf16 %v419_v61, %v411_v59 }
  0xf9   :  { %v421_v11 = vmax.f32 %v341_v18, 0.0  ;;  %v362_v15 = vadd.f32 %v1547_v7, %v1471_v27  ;;  %v379_v27 = vmax.f32 %v1586_v35, 0.0  ;;  %v331_v7 = vadd.f32 %v1536_v55, %v1476_v31 }
  0xfa   :  { %v427_v34 = vmax.f32 %v288_v29, 0.0  ;;  %v428_v6 = vmax.f32 %v316_v30, 0.0  ;;  %v395_v29 = vmax.f32 %v278_v36, 0.0  ;;  %v396_v30 = vmax.f32 %v306_v51, 0.0 }
  0xfb   :  { %v414_v1 = vmax.f32 %v367_v25, 0.0  ;;  %v406_v36 = vmax.f32 %v364_v14, 0.0  ;;  %v329_v61 = vadd.f32 %v1524_v50, %v1465_v22  ;;  %v357_v35 = vadd.f32 %v1526_v57, %v1465_v22  ;;  %v1677_v57 = vpop.permute.xlu2 %484 }
  0xfc   :  { %v466_v41 = vpack.c.bf16 %v427_v34, %v427_v34  ;;  %v467_v42 = vpack.c.bf16 %v428_v6, %v428_v6  ;;  %v422_v34 = vmax.f32 %v369_v19, 0.0  ;;  %v450_v13 = vpack.c.bf16 %v403_v2, %v395_v29 }
  0xfd   :  { %v451_v16 = vpack.c.bf16 %v404_v17, %v396_v30  ;;  %v413_v6 = vmax.f32 %v339_v24, 0.0  ;;  %v442_v0 = vpack.c.bf16 %v387_v60, %v379_v27  ;;  %v397_v55 = vmax.f32 %v334_v21, 0.0  ;;  %v1679_v60 = vpop.permute.xlu0 %489 }
  0xfe   :  { %v343_v46 = vpop.f32.mrf.mxu2  ;;  %v371_v47 = vpop.f32.mrf.mxu3  ;;  %v557_v48 = vsel %vm543_vm2, %v466_v41, 0  ;;  %v560_v56 = vsel %vm543_vm2, %v467_v42, 0  ;;  %v359_v41 = vadd.f32 %v1538_v62, %v1476_v31  ;;  %v405_v42 = vmax.f32 %v336_v10, 0.0 }
  0xff   :  { %v344_v52 = vadd.f32 %v343_v46, %v1451_v4  ;;  %v372_v53 = vadd.f32 %v371_v47, %v1451_v4  ;;  %1169 = vmatmul.msk.bf16.gmra.mxu0 %vm530_vm3, %v1595_v38  ;;  %1173 = vmatmul.msk.bf16.gmra.mxu1 %vm530_vm3, %v1595_v38  ;;  %v289_v54 = vpop.f32.mrf.mxu0  ;;  %v317_v63 = vpop.f32.mrf.mxu1  ;;  %v460_v43 = vpack.c.bf16 %v421_v11, %v413_v6  ;;  %v398_v46 = vmax.f32 %v362_v15, 0.0 }
 0x100   :  { %684 = vmatpush.bf16.msrb.mxu0 %v557_v48  ;;  %712 = vmatpush.bf16.msrb.mxu1 %v560_v56  ;;  %v461_v37 = vpack.c.bf16 %v422_v34, %v414_v1  ;;  %v389_v31 = vmax.f32 %v331_v7, 0.0  ;;  %v390_v62 = vmax.f32 %v359_v41, 0.0  ;;  %v452_v47 = vpack.c.bf16 %v405_v42, %v397_v55 }
 0x101   :  { %v429_v23 = vmax.f32 %v344_v52, 0.0  ;;  %v430_v4 = vmax.f32 %v372_v53, 0.0  ;;  %v453_v48 = vpack.c.bf16 %v406_v36, %v398_v46  ;;  %v381_v56 = vmax.f32 %v329_v61, 0.0 }
 0x102   :  { %v382_v51 = vmax.f32 %v357_v35, 0.0 }
 0x103   :  { %v468_v33 = vpack.c.bf16 %v429_v23, %v429_v23  ;;  %v469_v5 = vpack.c.bf16 %v430_v4, %v430_v4  ;;  %v444_v22 = vpack.c.bf16 %v389_v31, %v381_v56  ;;  %v1685_v63 = vpop.permute.xlu2 %857 }
 0x104   :  { %685 = vmatpush.bf16.msrb.mxu0 %v458_v26  ;;  %713 = vmatpush.bf16.msrb.mxu1 %v459_v28  ;;  %v445_v50 = vpack.c.bf16 %v390_v62, %v382_v51 }
 0x105   :  { %1177 = vmatmul.msk.bf16.gmra.mxu2 %vm530_vm3, %v1595_v38  ;;  %1181 = vmatmul.msk.bf16.gmra.mxu3 %vm530_vm3, %v1595_v38  ;;  %v563_v12 = vsel %vm543_vm2, %v468_v33, 0  ;;  %v566_v9 = vsel %vm543_vm2, %v469_v5, 0  ;;  %v1689_v19 = vpop.permute.xlu0 %862 }
 0x106   :  { %v345_v39 = vpop.f32.mrf.mxu2  ;;  %v373_v40 = vpop.f32.mrf.mxu3  ;;  %740 = vmatpush.bf16.msrb.mxu2 %v563_v12  ;;  %768 = vmatpush.bf16.msrb.mxu3 %v566_v9 }
 0x108   :  { %686 = vmatpush.bf16.msrb.mxu0 %v450_v13  ;;  %714 = vmatpush.bf16.msrb.mxu1 %v451_v16 }
 0x10a   :  { %741 = vmatpush.bf16.msrb.mxu2 %v460_v43  ;;  %769 = vmatpush.bf16.msrb.mxu3 %v461_v37 }
 0x10b   :  { %v1701_v15 = vpop.permute.xlu2 %867 }
 0x10c   :  { %687 = vmatpush.bf16.msrb.mxu0 %v442_v0  ;;  %715 = vmatpush.bf16.msrb.mxu1 %v443_v44 }
 0x10d   :  { %v1709_v0 = vpop.permute.xlu0 %504 }
 0x10e   :  { %742 = vmatpush.bf16.msrb.mxu2 %v452_v47  ;;  %770 = vmatpush.bf16.msrb.mxu3 %v453_v48 }
 0x10f   :  { %1182 = vmatmul.msk.bf16.vlgmr.msrb.gmra.mxu0 %vm530_vm3, %v1522_v45  ;;  %1186 = vmatmul.msk.bf16.vlgmr.msrb.gmra.mxu1 %vm530_vm3, %v1522_v45 }
 0x112   :  { %743 = vmatpush.bf16.msrb.mxu2 %v444_v22  ;;  %771 = vmatpush.bf16.msrb.mxu3 %v445_v50 }
 0x115   :  { %1190 = vmatmul.msk.bf16.vlgmr.msrb.gmra.mxu2 %vm530_vm3, %v1522_v45  ;;  %1194 = vmatmul.msk.bf16.vlgmr.msrb.gmra.mxu3 %vm530_vm3, %v1522_v45  ;;  %v1675_v45 = vpop.permute.xlu1 %479 }
 0x11d   :  { %v1683_v52 = vpop.permute.xlu1 %494 }
 0x11f   :  { %1183 = vmatmul.msk.bf16.gmra.mxu0 %vm530_vm3, %v1543_v3  ;;  %1187 = vmatmul.msk.bf16.gmra.mxu1 %vm530_vm3, %v1543_v3 }
 0x125   :  { %1191 = vmatmul.msk.bf16.gmra.mxu2 %vm530_vm3, %v1543_v3  ;;  %1195 = vmatmul.msk.bf16.gmra.mxu3 %vm530_vm3, %v1543_v3  ;;  %v1697_v11 = vpop.permute.xlu1 %499 }
 0x12d   :  { %v1715_v62 = vpop.permute.xlu1 %872 }
 0x12f   :  { %1184 = vmatmul.msk.bf16.gmra.mxu0 %vm530_vm3, %v1564_v20  ;;  %1188 = vmatmul.msk.bf16.gmra.mxu1 %vm530_vm3, %v1564_v20 }
 0x135   :  { %1192 = vmatmul.msk.bf16.gmra.mxu2 %vm530_vm3, %v1564_v20  ;;  %1196 = vmatmul.msk.bf16.gmra.mxu3 %vm530_vm3, %v1564_v20 }
 0x13f   :  { %1185 = vmatmul.msk.bf16.gmra.mxu0 %vm530_vm3, %v1595_v38  ;;  %1189 = vmatmul.msk.bf16.gmra.mxu1 %vm530_vm3, %v1595_v38 }
 0x145   :  { %1193 = vmatmul.msk.bf16.gmra.mxu2 %vm530_vm3, %v1595_v38  ;;  %1197 = vmatmul.msk.bf16.gmra.mxu3 %vm530_vm3, %v1595_v38 }
 0x14c   :  { %v577_v3 = vpop.f32.mrf.mxu0  ;;  %v605_v32 = vpop.f32.mrf.mxu1 }
 0x14d   :  { %v578_v20 = vadd.f32 %v577_v3, %v1675_v45  ;;  %v606_v49 = vadd.f32 %v605_v32, %v1675_v45 }
 0x14f   :  { %v792_v59 = vmax.f32 %v578_v20, 0.0  ;;  %v793_v38 = vmax.f32 %v606_v49, 0.0 }
 0x151   :  { %v890_v24 = vmul.f32 %v1685_v63, %v792_v59  ;;  %v891_v25 = vmul.f32 %v1685_v63, %v793_v38 }
 0x154   :  { %v579_v53 = vpop.f32.mrf.mxu0  ;;  %v607_v54 = vpop.f32.mrf.mxu1 }
 0x155   :  { %v580_v8 = vadd.f32 %v579_v53, %v1677_v57  ;;  %v608_v18 = vadd.f32 %v607_v54, %v1677_v57 }
 0x157   :  { %v800_v2 = vmax.f32 %v580_v8, 0.0  ;;  %v801_v17 = vmax.f32 %v608_v18, 0.0 }
 0x158   :  { %v633_v23 = vpop.f32.mrf.mxu2  ;;  %v661_v4 = vpop.f32.mrf.mxu3 }
 0x159   :  { %v898_v26 = vmul.f32 %v1689_v19, %v800_v2  ;;  %v899_v28 = vmul.f32 %v1689_v19, %v801_v17  ;;  %v634_v33 = vadd.f32 %v633_v23, %v1675_v45  ;;  %v662_v5 = vadd.f32 %v661_v4, %v1675_v45 }
 0x15b   :  { %v946_v29 = vadd.f32 %v898_v26, %v890_v24  ;;  %v960_v30 = vadd.f32 %v899_v28, %v891_v25  ;;  %v794_v13 = vmax.f32 %v634_v33, 0.0  ;;  %v795_v16 = vmax.f32 %v662_v5, 0.0  ;;  %v1725_v24 = vpop.permute.xlu0 %877 }
 0x15c   :  { %v582_v10 = vpop.f32.mrf.mxu0  ;;  %v610_v14 = vpop.f32.mrf.mxu1 }
 0x15d   :  { %v583_v34 = vadd.f32 %v582_v10, %v1679_v60  ;;  %v611_v21 = vadd.f32 %v610_v14, %v1679_v60  ;;  %v892_v43 = vmul.f32 %v1685_v63, %v794_v13  ;;  %v893_v37 = vmul.f32 %v1685_v63, %v795_v16 }
 0x15f   :  { %v808_v12 = vmax.f32 %v583_v34, 0.0  ;;  %v809_v9 = vmax.f32 %v611_v21, 0.0 }
 0x160   :  { %v635_v6 = vpop.f32.mrf.mxu2  ;;  %v663_v1 = vpop.f32.mrf.mxu3 }
 0x161   :  { %v906_v39 = vmul.f32 %v1701_v15, %v808_v12  ;;  %v907_v40 = vmul.f32 %v1701_v15, %v809_v9  ;;  %v636_v27 = vadd.f32 %v635_v6, %v1677_v57  ;;  %v664_v58 = vadd.f32 %v663_v1, %v1677_v57  ;;  %v1731_v1 = vpop.permute.xlu2 %509 }
 0x163   :  { %v947_v7 = vadd.f32 %v946_v29, %v906_v39  ;;  %v961_v41 = vadd.f32 %v960_v30, %v907_v40  ;;  %v802_v42 = vmax.f32 %v636_v27, 0.0  ;;  %v803_v36 = vmax.f32 %v664_v58, 0.0 }
 0x164   :  { %v584_v61 = vpop.f32.mrf.mxu0  ;;  %v612_v35 = vpop.f32.mrf.mxu1 }
 0x165   :  { %v900_v44 = vmul.f32 %v1689_v19, %v802_v42  ;;  %v901_v55 = vmul.f32 %v1689_v19, %v803_v36  ;;  %v585_v46 = vadd.f32 %v584_v61, %v1683_v52  ;;  %v613_v31 = vadd.f32 %v612_v35, %v1683_v52 }
 0x167   :  { %v973_v47 = vadd.f32 %v900_v44, %v892_v43  ;;  %v986_v48 = vadd.f32 %v901_v55, %v893_v37  ;;  %v816_v56 = vmax.f32 %v585_v46, 0.0  ;;  %v817_v51 = vmax.f32 %v613_v31, 0.0 }
 0x168   :  { %v638_v22 = vpop.f32.mrf.mxu2  ;;  %v666_v50 = vpop.f32.mrf.mxu3 }
 0x169   :  { %v914_v3 = vmul.f32 %v1715_v62, %v816_v56  ;;  %v915_v32 = vmul.f32 %v1715_v62, %v817_v51  ;;  %v639_v20 = vadd.f32 %v638_v22, %v1679_v60  ;;  %v667_v49 = vadd.f32 %v666_v50, %v1679_v60 }
 0x16b   :  { %v948_v53 = vadd.f32 %v947_v7, %v914_v3  ;;  %v962_v54 = vadd.f32 %v961_v41, %v915_v32  ;;  %v810_v59 = vmax.f32 %v639_v20, 0.0  ;;  %v811_v38 = vmax.f32 %v667_v49, 0.0  ;;  %v1737_v7 = vpop.permute.xlu1 %882  ;;  %v1747_v49 = vpop.permute.xlu2 %887 }
 0x16c   :  { %v587_v8 = vpop.f32.mrf.mxu0  ;;  %v615_v18 = vpop.f32.mrf.mxu1 }
 0x16d   :  { %v908_v2 = vmul.f32 %v1701_v15, %v810_v59  ;;  %v909_v17 = vmul.f32 %v1701_v15, %v811_v38  ;;  %v588_v23 = vadd.f32 %v587_v8, %v1697_v11  ;;  %v616_v4 = vadd.f32 %v615_v18, %v1697_v11 }
 0x16f   :  { %v974_v25 = vadd.f32 %v973_v47, %v908_v2  ;;  %v987_v26 = vadd.f32 %v986_v48, %v909_v17  ;;  %v824_v28 = vmax.f32 %v588_v23, 0.0  ;;  %v825_v29 = vmax.f32 %v616_v4, 0.0 }
 0x170   :  { %v640_v30 = vpop.f32.mrf.mxu2  ;;  %v668_v33 = vpop.f32.mrf.mxu3 }
 0x171   :  { %v922_v5 = vmul.f32 %v1725_v24, %v824_v28  ;;  %v923_v10 = vmul.f32 %v1725_v24, %v825_v29  ;;  %v641_v14 = vadd.f32 %v640_v30, %v1683_v52  ;;  %v669_v34 = vadd.f32 %v668_v33, %v1683_v52 }
 0x173   :  { %v949_v21 = vadd.f32 %v948_v53, %v922_v5  ;;  %v963_v12 = vadd.f32 %v962_v54, %v923_v10  ;;  %v818_v9 = vmax.f32 %v641_v14, 0.0  ;;  %v819_v13 = vmax.f32 %v669_v34, 0.0 }
 0x174   :  { %v589_v16 = vpop.f32.mrf.mxu0  ;;  %v617_v6 = vpop.f32.mrf.mxu1 }
 0x175   :  { %v916_v39 = vmul.f32 %v1715_v62, %v818_v9  ;;  %v917_v40 = vmul.f32 %v1715_v62, %v819_v13  ;;  %v590_v27 = vadd.f32 %v589_v16, %v1709_v0  ;;  %v618_v58 = vadd.f32 %v617_v6, %v1709_v0 }
 0x177   :  { %v975_v41 = vadd.f32 %v974_v25, %v916_v39  ;;  %v988_v42 = vadd.f32 %v987_v26, %v917_v40  ;;  %v832_v36 = vmax.f32 %v590_v27, 0.0  ;;  %v833_v43 = vmax.f32 %v618_v58, 0.0 }
 0x178   :  { %v643_v37 = vpop.f32.mrf.mxu2  ;;  %v671_v61 = vpop.f32.mrf.mxu3 }
 0x179   :  { %v930_v35 = vmul.f32 %v1737_v7, %v832_v36  ;;  %v931_v44 = vmul.f32 %v1737_v7, %v833_v43  ;;  %v644_v55 = vadd.f32 %v643_v37, %v1697_v11  ;;  %v672_v46 = vadd.f32 %v671_v61, %v1697_v11  ;;  %v1055_v36 = vpop.permute.xlu0 %1054 }
 0x17b   :  { %v950_v31 = vadd.f32 %v949_v21, %v930_v35  ;;  %v964_v47 = vadd.f32 %v963_v12, %v931_v44  ;;  %v826_v48 = vmax.f32 %v644_v55, 0.0  ;;  %v827_v56 = vmax.f32 %v672_v46, 0.0 }
 0x17c   :  { %v592_v51 = vpop.f32.mrf.mxu0  ;;  %v620_v22 = vpop.f32.mrf.mxu1 }
 0x17d   :  { %v924_v50 = vmul.f32 %v1725_v24, %v826_v48  ;;  %v925_v3 = vmul.f32 %v1725_v24, %v827_v56  ;;  %v593_v32 = vadd.f32 %v592_v51, %v1731_v1  ;;  %v621_v20 = vadd.f32 %v620_v22, %v1731_v1 }
 0x17e   :  { %v1761_v56 = vperm.slane %v1055_v36, 0 }
 0x17f   :  { %v976_v53 = vadd.f32 %v975_v41, %v924_v50  ;;  %v989_v54 = vadd.f32 %v988_v42, %v925_v3  ;;  %v840_v59 = vmax.f32 %v593_v32, 0.0  ;;  %v841_v38 = vmax.f32 %v621_v20, 0.0 }
 0x180   :  { %v645_v8 = vpop.f32.mrf.mxu2  ;;  %v673_v18 = vpop.f32.mrf.mxu3 }
 0x181   :  { %v938_v2 = vmul.f32 %v1747_v49, %v840_v59  ;;  %v939_v17 = vmul.f32 %v1747_v49, %v841_v38  ;;  %v646_v23 = vadd.f32 %v645_v8, %v1709_v0  ;;  %v674_v4 = vadd.f32 %v673_v18, %v1709_v0 }
 0x183   :  { %v952_v25 = vsel %vm951_vm4, %v938_v2, 0.0  ;;  %v965_v26 = vsel %vm951_vm4, %v939_v17, 0.0  ;;  %v834_v28 = vmax.f32 %v646_v23, 0.0  ;;  %v835_v29 = vmax.f32 %v674_v4, 0.0 }
 0x184   :  { %v953_v30 = vadd.f32 %v952_v25, %v950_v31  ;;  %v966_v33 = vadd.f32 %v965_v26, %v964_v47  ;;  %v594_v5 = vpop.f32.mrf.mxu0  ;;  %v622_v10 = vpop.f32.mrf.mxu1 }
 0x185   :  { %v932_v14 = vmul.f32 %v1737_v7, %v834_v28  ;;  %v933_v34 = vmul.f32 %v1737_v7, %v835_v29 }
 0x186   :  { %v954_v21 = vrot.slane %v953_v30, 4  ;;  %v967_v12 = vrot.slane %v966_v33, 4 }
 0x187   :  { %v977_v9 = vadd.f32 %v976_v53, %v932_v14  ;;  %v990_v13 = vadd.f32 %v989_v54, %v933_v34 }
 0x188   :  { %v955_v16 = vadd.f32 %v954_v21, %v953_v30  ;;  %v968_v6 = vadd.f32 %v967_v12, %v966_v33  ;;  %v648_v39 = vpop.f32.mrf.mxu2  ;;  %v676_v40 = vpop.f32.mrf.mxu3 }
 0x189   :  { %v649_v27 = vadd.f32 %v648_v39, %v1731_v1  ;;  %v677_v58 = vadd.f32 %v676_v40, %v1731_v1 }
 0x18a   :  { %v956_v41 = vrot.slane %v955_v16, 2  ;;  %v969_v42 = vrot.slane %v968_v6, 2 }
 0x18b   :  { %v842_v43 = vmax.f32 %v649_v27, 0.0  ;;  %v843_v37 = vmax.f32 %v677_v58, 0.0 }
 0x18c   :  { %v957_v61 = vadd.f32 %v956_v41, %v955_v16  ;;  %v970_v35 = vadd.f32 %v969_v42, %v968_v6  ;;  %v689_v44 = vpop.f32.mrf.mxu0  ;;  %v717_v55 = vpop.f32.mrf.mxu1 }
 0x18d   :  { %v940_v46 = vmul.f32 %v1747_v49, %v842_v43  ;;  %v941_v31 = vmul.f32 %v1747_v49, %v843_v37 }
 0x18e   :  { %v958_v47 = vrot.slane %v957_v61, 1  ;;  %v971_v48 = vrot.slane %v970_v35, 1 }
 0x18f   :  { %v978_v51 = vsel %vm951_vm4, %v940_v46, 0.0  ;;  %v991_v22 = vsel %vm951_vm4, %v941_v31, 0.0 }
 0x190   :  { %v959_v50 = vadd.f32 %v958_v47, %v957_v61  ;;  %v972_v3 = vadd.f32 %v971_v48, %v970_v35  ;;  %v979_v32 = vadd.f32 %v978_v51, %v977_v9  ;;  %v992_v20 = vadd.f32 %v991_v22, %v990_v13  ;;  %v650_v53 = vpop.f32.mrf.mxu2  ;;  %v678_v54 = vpop.f32.mrf.mxu3 }
 0x191   :  { %v690_v48 = vadd.f32 %v689_v44, %v1675_v45  ;;  %v718_v51 = vadd.f32 %v717_v55, %v1675_v45 }
 0x192   :  { %v980_v59 = vrot.slane %v979_v32, 4  ;;  %v993_v38 = vrot.slane %v992_v20, 4  ;;  %v1059_v8 = vadd.f32 %v1761_v56, %v972_v3  ;;  %v1058_v4 = vadd.f32 %v1761_v56, %v959_v50 }
 0x193   :  { %v797_v44 = vmax.f32 %v718_v51, 0.0 }
 0x194   :  { %v981_v18 = vadd.f32 %v980_v59, %v979_v32  ;;  %v994_v2 = vadd.f32 %v993_v38, %v992_v20  ;;  %v691_v17 = vpop.f32.mrf.mxu0  ;;  %v719_v23 = vpop.f32.mrf.mxu1  ;;  %v1074_v25 = vrot.slane %v1059_v8, 7 }
 0x195   :  { %v692_v31 = vadd.f32 %v691_v17, %v1677_v57  ;;  %v720_v47 = vadd.f32 %v719_v23, %v1677_v57 }
 0x196   :  { %v982_v26 = vrot.slane %v981_v18, 2  ;;  %v995_v28 = vrot.slane %v994_v2, 2  ;;  %v1081_v29 = vsel %vm543_vm2, %v1058_v4, %v1074_v25 }
 0x197   :  { %v804_v20 = vmax.f32 %v692_v31, 0.0  ;;  %v805_v53 = vmax.f32 %v720_v47, 0.0 }
 0x198   :  { %v983_v30 = vadd.f32 %v982_v26, %v981_v18  ;;  %v996_v33 = vadd.f32 %v995_v28, %v994_v2  ;;  %v745_v5 = vpop.f32.mrf.mxu2  ;;  %v773_v10 = vpop.f32.mrf.mxu3  ;;  %v796_v18 = vmax.f32 %v690_v48, 0.0 }
 0x199   :  { %v746_v54 = vadd.f32 %v745_v5, %v1675_v45  ;;  %v774_v59 = vadd.f32 %v773_v10, %v1675_v45  ;;  %v902_v45 = vmul.f32 %v1689_v19, %v804_v20 }
 0x19a   :  { %v984_v14 = vrot.slane %v983_v30, 1  ;;  %v997_v34 = vrot.slane %v996_v33, 1 }
 0x19c   :  { %v985_v21 = vadd.f32 %v984_v14, %v983_v30  ;;  %v998_v12 = vadd.f32 %v997_v34, %v996_v33  ;;  %v694_v9 = vpop.f32.mrf.mxu0  ;;  %v722_v13 = vpop.f32.mrf.mxu1  ;;  %v798_v30 = vmax.f32 %v746_v54, 0.0  ;;  %v799_v33 = vmax.f32 %v774_v59, 0.0 }
 0x19d   :  { %v695_v22 = vadd.f32 %v694_v9, %v1679_v60  ;;  %v723_v50 = vadd.f32 %v722_v13, %v1679_v60 }
 0x19e   :  { %v1060_v16 = vadd.f32 %v1761_v56, %v985_v21  ;;  %v1061_v6 = vadd.f32 %v1761_v56, %v998_v12  ;;  %v895_v21 = vmul.f32 %v1685_v63, %v797_v44 }
 0x19f   :  { %v812_v2 = vmax.f32 %v695_v22, 0.0  ;;  %v813_v55 = vmax.f32 %v723_v50, 0.0 }
 0x1a0   :  { %v747_v39 = vpop.f32.mrf.mxu2  ;;  %v775_v40 = vpop.f32.mrf.mxu3  ;;  %v1075_v27 = vrot.slane %v1060_v16, 6  ;;  %v1076_v58 = vrot.slane %v1061_v6, 5 }
 0x1a1   :  { %v748_v17 = vadd.f32 %v747_v39, %v1677_v57  ;;  %v776_v23 = vadd.f32 %v775_v40, %v1677_v57  ;;  %v894_v57 = vmul.f32 %v1685_v63, %v796_v18  ;;  %v910_v12 = vmul.f32 %v1701_v15, %v812_v2 }
 0x1a2   :  { %v1083_v41 = vsel %vm1082_vm5, %v1075_v27, %v1076_v58  ;;  %v911_v9 = vmul.f32 %v1701_v15, %v813_v55 }
 0x1a3   :  { %v1771_v43 = vsel %vm951_vm4, %v1081_v29, %v1083_v41  ;;  %v903_v29 = vmul.f32 %v1689_v19, %v805_v53  ;;  %v806_v13 = vmax.f32 %v748_v17, 0.0  ;;  %v807_v16 = vmax.f32 %v776_v23, 0.0 }
 0x1a4   :  { %v696_v42 = vpop.f32.mrf.mxu0  ;;  %v724_v36 = vpop.f32.mrf.mxu1  ;;  %v999_v58 = vadd.f32 %v902_v45, %v894_v57 }
 0x1a5   :  { %v697_v38 = vadd.f32 %v696_v42, %v1683_v52  ;;  %v725_v8 = vadd.f32 %v724_v36, %v1683_v52  ;;  %v1012_v41 = vadd.f32 %v903_v29, %v895_v21  ;;  %v896_v42 = vmul.f32 %v1685_v63, %v798_v30 }
 0x1a6   :  { %v897_v36 = vmul.f32 %v1685_v63, %v799_v33  ;;  %v1000_v48 = vadd.f32 %v999_v58, %v910_v12  ;;  %v904_v20 = vmul.f32 %v1689_v19, %v806_v13  ;;  %v905_v53 = vmul.f32 %v1689_v19, %v807_v16 }
 0x1a7   :  { %v820_v5 = vmax.f32 %v697_v38, 0.0  ;;  %v821_v10 = vmax.f32 %v725_v8, 0.0  ;;  %v1013_v51 = vadd.f32 %v1012_v41, %v911_v9 }
 0x1a8   :  { %v750_v37 = vpop.f32.mrf.mxu2  ;;  %v778_v61 = vpop.f32.mrf.mxu3  ;;  %v1038_v58 = vadd.f32 %v905_v53, %v897_v36 }
 0x1a9   :  { %v751_v22 = vadd.f32 %v750_v37, %v1679_v60  ;;  %v779_v50 = vadd.f32 %v778_v61, %v1679_v60 }
 0x1ab   :  { %v814_v55 = vmax.f32 %v751_v22, 0.0  ;;  %v815_v17 = vmax.f32 %v779_v50, 0.0 }
 0x1ac   :  { %v699_v35 = vpop.f32.mrf.mxu0  ;;  %v727_v46 = vpop.f32.mrf.mxu1 }
 0x1ad   :  { %v700_v4 = vadd.f32 %v699_v35, %v1697_v11  ;;  %v728_v25 = vadd.f32 %v727_v46, %v1697_v11  ;;  %v918_v35 = vmul.f32 %v1715_v62, %v820_v5  ;;  %v919_v46 = vmul.f32 %v1715_v62, %v821_v10 }
 0x1ae   :  { %v912_v57 = vmul.f32 %v1701_v15, %v814_v55  ;;  %v913_v21 = vmul.f32 %v1701_v15, %v815_v17 }
 0x1af   :  { %v828_v6 = vmax.f32 %v700_v4, 0.0  ;;  %v829_v39 = vmax.f32 %v728_v25, 0.0  ;;  %v1001_v2 = vadd.f32 %v1000_v48, %v918_v35  ;;  %v1014_v60 = vadd.f32 %v1013_v51, %v919_v46 }
 0x1b0   :  { %v752_v3 = vpop.f32.mrf.mxu2  ;;  %v780_v32 = vpop.f32.mrf.mxu3  ;;  %v1039_v48 = vadd.f32 %v1038_v58, %v913_v21 }
 0x1b1   :  { %v926_v54 = vmul.f32 %v1725_v24, %v828_v6  ;;  %v927_v63 = vmul.f32 %v1725_v24, %v829_v39  ;;  %v753_v8 = vadd.f32 %v752_v3, %v1683_v52  ;;  %v781_v18 = vadd.f32 %v780_v32, %v1683_v52 }
 0x1b3   :  { %v1002_v25 = vadd.f32 %v1001_v2, %v926_v54  ;;  %v822_v45 = vmax.f32 %v753_v8, 0.0  ;;  %v823_v29 = vmax.f32 %v781_v18, 0.0 }
 0x1b4   :  { %v701_v26 = vpop.f32.mrf.mxu0  ;;  %v729_v28 = vpop.f32.mrf.mxu1 }
 0x1b5   :  { %v702_v14 = vadd.f32 %v701_v26, %v1709_v0  ;;  %v730_v34 = vadd.f32 %v729_v28, %v1709_v0  ;;  %v1015_v26 = vadd.f32 %v1014_v60, %v927_v63  ;;  %v920_v41 = vmul.f32 %v1715_v62, %v822_v45 }
 0x1b7   :  { %v836_v31 = vmax.f32 %v702_v14, 0.0  ;;  %v837_v47 = vmax.f32 %v730_v34, 0.0 }
 0x1b8   :  { %v755_v40 = vpop.f32.mrf.mxu2  ;;  %v783_v27 = vpop.f32.mrf.mxu3 }
 0x1b9   :  { %v934_v61 = vmul.f32 %v1737_v7, %v836_v31  ;;  %v935_v19 = vmul.f32 %v1737_v7, %v837_v47  ;;  %v756_v3 = vadd.f32 %v755_v40, %v1697_v11  ;;  %v784_v52 = vadd.f32 %v783_v27, %v1697_v11 }
 0x1ba   :  { %v1025_v27 = vadd.f32 %v904_v20, %v896_v42 }
 0x1bb   :  { %v1003_v5 = vadd.f32 %v1002_v25, %v934_v61  ;;  %v1016_v10 = vadd.f32 %v1015_v26, %v935_v19  ;;  %v830_v9 = vmax.f32 %v756_v3, 0.0  ;;  %v831_v13 = vmax.f32 %v784_v52, 0.0 }
 0x1bc   :  { %v704_v59 = vpop.f32.mrf.mxu0  ;;  %v732_v38 = vpop.f32.mrf.mxu1  ;;  %v1026_v47 = vadd.f32 %v1025_v27, %v912_v57 }
 0x1bd   :  { %v705_v44 = vadd.f32 %v704_v59, %v1731_v1  ;;  %v733_v37 = vadd.f32 %v732_v38, %v1731_v1  ;;  %v928_v51 = vmul.f32 %v1725_v24, %v830_v9  ;;  %v929_v22 = vmul.f32 %v1725_v24, %v831_v13 }
 0x1be   :  { %v1027_v42 = vadd.f32 %v1026_v47, %v920_v41 }
 0x1bf   :  { %v844_v23 = vmax.f32 %v705_v44, 0.0  ;;  %v845_v4 = vmax.f32 %v733_v37, 0.0 }
 0x1c0   :  { %v757_v32 = vpop.f32.mrf.mxu2  ;;  %v785_v28 = vpop.f32.mrf.mxu3  ;;  %v1028_v2 = vadd.f32 %v1027_v42, %v928_v51 }
 0x1c1   :  { %v942_v30 = vmul.f32 %v1747_v49, %v844_v23  ;;  %v943_v33 = vmul.f32 %v1747_v49, %v845_v4  ;;  %v758_v14 = vadd.f32 %v757_v32, %v1709_v0  ;;  %v786_v34 = vadd.f32 %v785_v28, %v1709_v0 }
 0x1c2   :  { %v921_v0 = vmul.f32 %v1715_v62, %v823_v29 }
 0x1c3   :  { %v1004_v11 = vsel %vm951_vm4, %v942_v30, 0.0  ;;  %v1017_v12 = vsel %vm951_vm4, %v943_v33, 0.0  ;;  %v838_v31 = vmax.f32 %v758_v14, 0.0  ;;  %v839_v15 = vmax.f32 %v786_v34, 0.0 }
 0x1c4   :  { %v1005_v16 = vadd.f32 %v1004_v11, %v1003_v5  ;;  %v1018_v6 = vadd.f32 %v1017_v12, %v1016_v10  ;;  %v706_v39 = vpop.f32.mrf.mxu0  ;;  %v734_v40 = vpop.f32.mrf.mxu1  ;;  %v1040_v36 = vadd.f32 %v1039_v48, %v921_v0 }
 0x1c5   :  { %v936_v8 = vmul.f32 %v1737_v7, %v838_v31  ;;  %v937_v18 = vmul.f32 %v1737_v7, %v839_v15 }
 0x1c6   :  { %v1006_v35 = vrot.slane %v1005_v16, 4  ;;  %v1019_v46 = vrot.slane %v1018_v6, 4  ;;  %v1041_v24 = vadd.f32 %v1040_v36, %v929_v22 }
 0x1c7   :  { %v1029_v17 = vadd.f32 %v1028_v2, %v936_v8 }
 0x1c8   :  { %v1007_v50 = vadd.f32 %v1006_v35, %v1005_v16  ;;  %v1020_v54 = vadd.f32 %v1019_v46, %v1018_v6  ;;  %v760_v63 = vpop.f32.mrf.mxu2  ;;  %v788_v59 = vpop.f32.mrf.mxu3  ;;  %v1042_v23 = vadd.f32 %v1041_v24, %v937_v18 }
 0x1c9   :  { %v761_v20 = vadd.f32 %v760_v63, %v1731_v1  ;;  %v789_v62 = vadd.f32 %v788_v59, %v1731_v1 }
 0x1ca   :  { %v1008_v53 = vrot.slane %v1007_v50, 2  ;;  %v1021_v38 = vrot.slane %v1020_v54, 2 }
 0x1cb   :  { %v846_v44 = vmax.f32 %v761_v20, 0.0  ;;  %v847_v37 = vmax.f32 %v789_v62, 0.0 }
 0x1cc   :  { %v1009_v19 = vadd.f32 %v1008_v53, %v1007_v50  ;;  %v1022_v55 = vadd.f32 %v1021_v38, %v1020_v54 }
 0x1cd   :  { %v944_v60 = vmul.f32 %v1747_v49, %v846_v44  ;;  %v945_v61 = vmul.f32 %v1747_v49, %v847_v37 }
 0x1ce   :  { %v1010_v52 = vrot.slane %v1009_v19, 1  ;;  %v1023_v32 = vrot.slane %v1022_v55, 1 }
 0x1cf   :  { %v1030_v1 = vsel %vm951_vm4, %v944_v60, 0.0  ;;  %v1043_v4 = vsel %vm951_vm4, %v945_v61, 0.0 }
 0x1d0   :  { %v1031_v25 = vadd.f32 %v1030_v1, %v1029_v17  ;;  %v1044_v26 = vadd.f32 %v1043_v4, %v1042_v23  ;;  %v762_v3 = vpop.f32.mrf.mxu2  ;;  %v790_v7 = vpop.f32.mrf.mxu3  ;;  %v1011_v33 = vadd.f32 %v1010_v52, %v1009_v19  ;;  %v1024_v49 = vadd.f32 %v1023_v32, %v1022_v55 }
 0x1d2   :  { %v1032_v28 = vrot.slane %v1031_v25, 4  ;;  %v1045_v45 = vrot.slane %v1044_v26, 4  ;;  %v1062_v11 = vadd.f32 %v1761_v56, %v1011_v33  ;;  %v1063_v12 = vadd.f32 %v1761_v56, %v1024_v49 }
 0x1d4   :  { %v1033_v29 = vadd.f32 %v1032_v28, %v1031_v25  ;;  %v1046_v30 = vadd.f32 %v1045_v45, %v1044_v26  ;;  %v1077_v39 = vrot.slane %v1062_v11, 4  ;;  %v1078_v40 = vrot.slane %v1063_v12, 3 }
 0x1d6   :  { %v1034_v5 = vrot.slane %v1033_v29, 2  ;;  %v1047_v10 = vrot.slane %v1046_v30, 2  ;;  %v1086_v41 = vsel %vm1085_vm6, %v1077_v39, %v1078_v40 }
 0x1d8   :  { %v1035_v14 = vadd.f32 %v1034_v5, %v1033_v29  ;;  %v1048_v34 = vadd.f32 %v1047_v10, %v1046_v30 }
 0x1da   :  { %v1036_v57 = vrot.slane %v1035_v14, 1  ;;  %v1049_v21 = vrot.slane %v1048_v34, 1 }
 0x1dc   :  { %v1037_v9 = vadd.f32 %v1036_v57, %v1035_v14  ;;  %v1050_v13 = vadd.f32 %v1049_v21, %v1048_v34 }
 0x1de   :  { %v1064_v16 = vadd.f32 %v1761_v56, %v1037_v9  ;;  %v1065_v6 = vadd.f32 %v1761_v56, %v1050_v13 }
 0x1e0   :  { %v1079_v27 = vrot.slane %v1064_v16, 2  ;;  %v1080_v58 = vrot.slane %v1065_v6, 1 }
 0x1e2   :  { %v1088_v0 = vsel %vm1087_vm7, %v1079_v27, %v1080_v58 }
 0x1e3   :  { %v1090_v35 = vsel %vm1089_vm8, %v1086_v41, %v1088_v0 }
 0x1e4   :  { %v1091_v56 = vsel %vm126_vm0, %v1771_v43, %v1090_v35 }
 0x1e5   :  { %1093 = vst [vmem:[#allocation3] sm:$0xff] %v1091_v56 }
 0x1e6   :  { %1104 = dma.vmem_to_hbm [thread:$0]  %s1100_s21, 128, %s1102_s24, [#allocation4]  }
 0x1e7   :  { %1233 = dma.done.wait [#allocation4], 128  }
 0x1e8   :  { %1234 = vsyncadd [#allocation4], 4294967168 }
 0x1e9   :  { %1109 = vsyncpa [#allocation4], 1 }

</bundles_post_ra>
